<compile_context>
chip_gen: v7x
topology: tpu7x:2x2x1
jax: 0.10.0
libtpu: 0.0.40
codegen_flags: <defaults>
</compile_context>

<pallas_src>
import functools

import jax
import jax.numpy as jnp
import numpy as np
from jax.experimental import pallas as pl
from jax.experimental.pallas import tpu as pltpu

# Class weights hard-coded in OhemCrossEntropy2d.__init__ (19 Cityscapes classes).
CLASS_WEIGHTS_LIST = (0.8373, 0.918, 0.866, 1.0345, 1.0166, 0.9969, 0.9754,
                      1.0489, 0.8786, 1.0023, 0.9539, 0.9843, 1.1116, 0.9037,
                      1.0865, 1.0955, 1.0865, 1.1529, 1.0507)
CLASS_WEIGHTS = jnp.asarray(CLASS_WEIGHTS_LIST, dtype=jnp.float32)
NCLASS = len(CLASS_WEIGHTS_LIST)

_PROB_SENTINEL = 2.0   # > any softmax prob and > any threshold (<= 1.0) -> never kept


# ----------------------------------------------------------------------------
# Kernel A: per-pixel weighted cross entropy + softmax prob at the target class.
# Layout inside the kernel: (C, TILE_HW) -> classes in sublanes, pixels in lanes.
# ----------------------------------------------------------------------------
def _make_ce_kernel(ignore_label, class_weights):
    def kernel(score_ref, target_ref, prob_ref, loss_ref):
        s = score_ref[0].astype(jnp.float32)        # (C, T)  (bf16 inputs cast here)
        t = target_ref[0]                           # (1, T)  int32
        valid = t != ignore_label                   # (1, T)  bool
        t0 = jnp.where(valid, t, 0)                 # ignored -> class 0

        cls = jax.lax.broadcasted_iota(jnp.int32, s.shape, 0)   # (C, T) class ids
        onehot = cls == t0                                      # (C, T) bool

        # Three class-axis (sublane) reductions: max, sum(exp), logit@target.
        m = jnp.max(s, axis=0, keepdims=True)                   # (1, T)
        e = jnp.exp(s - m)
        denom = jnp.sum(e, axis=0, keepdims=True)                # (1, T)
        s_t = jnp.sum(jnp.where(onehot, s, 0.0), axis=0, keepdims=True)
        logp_t = (s_t - m) - jnp.log(denom)                      # log softmax @ target

        # Class weight at target via an unrolled scalar-constant select chain:
        # removes the weight input stream and a 4th class-axis reduction.
        w_t = jnp.full_like(logp_t, jnp.float32(class_weights[0]))
        for c in range(1, len(class_weights)):
            w_t = jnp.where(t0 == c, jnp.float32(class_weights[c]), w_t)

        # Lane-dense outputs; ignored/padded pixels: prob = sentinel, loss = 0.
        prob_ref[0] = jnp.where(valid, jnp.exp(logp_t), jnp.float32(_PROB_SENTINEL))
        loss_ref[0] = jnp.where(valid, -w_t * logp_t, jnp.float32(0.0))

    return kernel


# ----------------------------------------------------------------------------
# Kernel B: gridded masked-mean reduction of the kept losses given the threshold.
# VMEM accumulators persist across the (sequential) grid; single divide at end.
# ----------------------------------------------------------------------------
def _ohem_reduce_kernel(prob_ref, loss_ref, thr_ref, out_ref, acc_sum, acc_cnt):
    @pl.when((pl.program_id(0) == 0) & (pl.program_id(1) == 0))
    def _():
        acc_sum[...] = jnp.zeros_like(acc_sum)
        acc_cnt[...] = jnp.zeros_like(acc_cnt)

    thr = thr_ref[0]                              # scalar from SMEM
    p = prob_ref[0]                               # (1, T); ignored/pad carry sentinel
    l = loss_ref[0]                               # (1, T)
    keep = (p < thr).astype(jnp.float32)
    acc_sum[...] += jnp.sum(keep * l, axis=-1, keepdims=True)
    acc_cnt[...] += jnp.sum(keep, axis=-1, keepdims=True)

    @pl.when((pl.program_id(0) == pl.num_programs(0) - 1)
             & (pl.program_id(1) == pl.num_programs(1) - 1))
    def _():
        # torch: pixel_losses[pred < threshold].mean()  (plain mean over kept count;
        # empty selection -> NaN, matching torch's mean of an empty tensor).
        out_ref[...] = acc_sum[...] / acc_cnt[...]


# ----------------------------------------------------------------------------
# OhemCrossEntropy2d.forward equivalent (fully traced / jittable).
# ----------------------------------------------------------------------------
def ohem_ce_loss(score, target, *, thres=0.7, min_kept=100000, ignore_index=-1,
                 tile_hw=4096):
    N, C, H, W = score.shape
    assert C == NCLASS, "class weights are hard-coded for 19 classes"
    assert target.shape == (N, H, W)
    # TODO(synk): F.upsample(bilinear) branch (score spatial != target spatial) not implemented.
    min_kept = max(1, int(min_kept))
    HW = H * W

    # Free reshapes only (no transpose / astype HBM pass over the logits).
    score3d = score.reshape(N, C, HW)
    target3d = target.reshape(N, 1, HW).astype(jnp.int32)

    # Pixel tile: large lane-dense tiles.  T is either the full HW (single block)
    # or a multiple of 128; a ragged tail is padded with ignore_index targets so
    # no in-kernel lane masking is needed.
    T = HW if HW <= tile_hw else tile_hw
    HWp = pl.cdiv(HW, T) * T
    if HWp != HW:
        score3d = jnp.pad(score3d, ((0, 0), (0, 0), (0, HWp - HW)))
        target3d = jnp.pad(target3d, ((0, 0), (0, 0), (0, HWp - HW)),
                           constant_values=ignore_index)

    grid = (N, HWp // T)
    prob, loss = pl.pallas_call(
        _make_ce_kernel(ignore_index, CLASS_WEIGHTS_LIST),
        out_shape=(jax.ShapeDtypeStruct((N, 1, HWp), jnp.float32),
                   jax.ShapeDtypeStruct((N, 1, HWp), jnp.float32)),
        grid=grid,
        in_specs=[pl.BlockSpec((1, C, T), lambda n, t: (n, 0, t)),
                  pl.BlockSpec((1, 1, T), lambda n, t: (n, 0, t))],
        out_specs=(pl.BlockSpec((1, 1, T), lambda n, t: (n, 0, t)),
                   pl.BlockSpec((1, 1, T), lambda n, t: (n, 0, t))),
        compiler_params=pltpu.CompilerParams(
            dimension_semantics=("parallel", "parallel")),
    )(score3d, target3d)

    # --- OHEM threshold selection: traced (no host sync), top_k instead of sort ---
    valid_flat = target3d.reshape(-1) != ignore_index
    n_valid = jnp.sum(valid_flat.astype(jnp.int32))
    prob_flat = prob.reshape(-1)
    loss_flat = loss.reshape(-1)
    P_total = N * HW                       # un-padded pixel count (fallback divisor)
    P_pad = N * HWp
    k_static = min(min_kept + 1, P_pad)    # static top_k size covers the dynamic index

    def _ohem_branch():
        neg = jnp.where(valid_flat, -prob_flat, -jnp.inf)
        topk_vals, _ = jax.lax.top_k(neg, k_static)   # k smallest kept probs (negated)
        idx = jnp.minimum(jnp.int32(min_kept), n_valid - 1)
        min_value = -topk_vals[idx]
        thr = jnp.maximum(min_value, jnp.float32(thres)).reshape(1).astype(jnp.float32)

        mean = pl.pallas_call(
            _ohem_reduce_kernel,
            out_shape=jax.ShapeDtypeStruct((1, 1), jnp.float32),
            grid=grid,
            in_specs=[pl.BlockSpec((1, 1, T), lambda n, t: (n, 0, t)),
                      pl.BlockSpec((1, 1, T), lambda n, t: (n, 0, t)),
                      pl.BlockSpec(memory_space=pltpu.MemorySpace.SMEM)],
            out_specs=pl.BlockSpec((1, 1), lambda n, t: (0, 0)),
            scratch_shapes=[pltpu.VMEM((1, 1), jnp.float32),
                            pltpu.VMEM((1, 1), jnp.float32)],
            compiler_params=pltpu.CompilerParams(
                dimension_semantics=("arbitrary", "arbitrary")),
        )(prob, loss, thr)
        return mean[0, 0]

    def _fallback_branch():
        # torch: pred.numel() <= 1 -> no trimming -> mean over ALL per-pixel
        # losses (ignored pixels contribute 0 each).
        return jnp.sum(loss_flat) / jnp.float32(P_total)

    return jax.lax.cond(n_valid > 1, _ohem_branch, _fallback_branch)


# ----------------------------------------------------------------------------
# OHEMSegmentationLosses.forward equivalent (se_loss=False paths).
# ----------------------------------------------------------------------------
def ohem_segmentation_losses(inputs, targets, *, se_loss=False, aux=False,
                             aux_weight=0.4, thres=0.7, min_kept=100000,
                             ignore_index=-1):
    ce = functools.partial(ohem_ce_loss, thres=thres, min_kept=min_kept,
                           ignore_index=ignore_index)
    if (not se_loss) and (not aux):
        preds = list(inputs)
        return ce(preds[0], targets)
    elif not se_loss:
        preds = list(inputs)
        return ce(preds[0], targets) + aux_weight * ce(preds[1], targets)
    else:
        # TODO(synk): se_loss branches (BCELoss on sigmoid(se_pred) vs torch.histc
        # label vector) not implemented; default module config never takes them.
        raise NotImplementedError("se_loss branch not implemented")


# ----------------------------------------------------------------------------
# Pure-JAX reference for verification.
# ----------------------------------------------------------------------------
def _reference_loss(score, target, thres=0.7, min_kept=100000, ignore_index=-1):
    N, C, H, W = score.shape
    logits = jnp.transpose(score, (0, 2, 3, 1)).reshape(-1, C).astype(jnp.float32)
    tgt = target.reshape(-1)
    valid = tgt != ignore_index
    t0 = jnp.where(valid, tgt, 0)
    logp = jax.nn.log_softmax(logits, axis=-1)
    logp_t = jnp.take_along_axis(logp, t0[:, None], axis=-1)[:, 0]
    prob_t = jnp.exp(logp_t)
    w_t = CLASS_WEIGHTS[t0]
    losses = jnp.where(valid, -w_t * logp_t, 0.0)
    n_valid = int(jnp.sum(valid))
    if n_valid <= 1:
        return jnp.mean(losses)
    k = min(int(min_kept), n_valid - 1)
    sp = jnp.sort(jnp.where(valid, prob_t, jnp.inf))
    thr = jnp.maximum(sp[k], jnp.float32(thres))
    keep = jnp.logical_and(valid, prob_t < thr)
    return jnp.sum(jnp.where(keep, losses, 0.0)) / jnp.sum(keep.astype(jnp.float32))


if __name__ == "__main__":
    key = jax.random.PRNGKey(0)
    k1, k2, k3 = jax.random.split(key, 3)

    N, C, H, W = 2, NCLASS, 16, 16           # nclass fixed to 19 by the class weights
    pred = jax.random.normal(k1, (N, C, H, W), dtype=jnp.float32)
    target = jax.random.randint(k2, (N, H, W), 0, C, dtype=jnp.int32)
    # sprinkle some ignore_index pixels
    ignore_mask = jax.random.uniform(k3, (N, H, W)) < 0.1
    target = jnp.where(ignore_mask, -1, target)

    # Whole loss is jittable end-to-end (no host round-trip in the OHEM glue).
    loss_fn = jax.jit(lambda p, t: ohem_segmentation_losses((p,), t))
    loss = jax.block_until_ready(loss_fn(pred, target))

    ref = jax.block_until_ready(_reference_loss(pred, target))
    np.testing.assert_allclose(np.asarray(loss), np.asarray(ref), rtol=1e-4, atol=1e-5)

    print("KERNEL_OK")
</pallas_src>

<mosaic_0001>
module attributes {stable_mosaic.version = 11 : i64} {
  func.func @kernel(%arg0: i32, %arg1: i32, %arg2: memref<1x19x256xf32, #tpu.memory_space<vmem>>, %arg3: memref<1x1x256xi32, #tpu.memory_space<vmem>>, %arg4: memref<1x1x256xf32, #tpu.memory_space<vmem>>, %arg5: memref<1x1x256xf32, #tpu.memory_space<vmem>>) attributes {dimension_semantics = [#tpu.dimension_semantics<parallel>, #tpu.dimension_semantics<parallel>], iteration_bounds = array<i64: 2, 1>, scalar_prefetch = 0 : i64, scratch_operands = 0 : i64, tpu.core_type = #tpu.core_type<tc>, window_params = [{transform_indices = @transform_0, window_bounds = array<i64: 1, 19, 256>}, {transform_indices = @transform_1, window_bounds = array<i64: 1, 1, 256>}, {transform_indices = @transform_2, window_bounds = array<i64: 1, 1, 256>}, {transform_indices = @transform_3, window_bounds = array<i64: 1, 1, 256>}]} {
    %c0 = arith.constant 0 : index
    %c0_0 = arith.constant 0 : index
    %c0_1 = arith.constant 0 : index
    %0 = vector.load %arg2[%c0, %c0_0, %c0_1] : memref<1x19x256xf32, #tpu.memory_space<vmem>>, vector<1x19x256xf32>
    %1 = vector.shape_cast %0 : vector<1x19x256xf32> to vector<19x256xf32>
    %c0_2 = arith.constant 0 : index
    %c0_3 = arith.constant 0 : index
    %c0_4 = arith.constant 0 : index
    %2 = vector.load %arg3[%c0_2, %c0_3, %c0_4] : memref<1x1x256xi32, #tpu.memory_space<vmem>>, vector<1x1x256xi32>
    %3 = vector.shape_cast %2 : vector<1x1x256xi32> to vector<1x256xi32>
    %c-1_i32 = arith.constant -1 : i32
    %4 = vector.broadcast %c-1_i32 : i32 to vector<1x256xi32>
    %5 = arith.cmpi ne, %3, %4 : vector<1x256xi32>
    %c0_i32 = arith.constant 0 : i32
    %6 = vector.broadcast %c0_i32 : i32 to vector<1x256xi32>
    %7 = arith.select %5, %3, %6 : vector<1x256xi1>, vector<1x256xi32>
    %8 = tpu.iota {dimensions = array<i32: 0>} : vector<19x256xi32>
    %9 = vector.broadcast %7 : vector<1x256xi32> to vector<19x256xi32>
    %10 = arith.cmpi eq, %8, %9 : vector<19x256xi32>
    %cst = arith.constant dense<0xFF800000> : vector<256xf32>
    %11 = vector.multi_reduction <maximumf>, %1, %cst [0] : vector<19x256xf32> to vector<256xf32>
    %12 = vector.shape_cast %11 : vector<256xf32> to vector<1x256xf32>
    %13 = vector.broadcast %12 : vector<1x256xf32> to vector<19x256xf32>
    %14 = arith.subf %1, %13 : vector<19x256xf32>
    %15 = math.exp %14 : vector<19x256xf32>
    %cst_5 = arith.constant dense<0.000000e+00> : vector<256xf32>
    %16 = vector.multi_reduction <add>, %15, %cst_5 [0] : vector<19x256xf32> to vector<256xf32>
    %17 = vector.shape_cast %16 : vector<256xf32> to vector<1x256xf32>
    %cst_6 = arith.constant 0.000000e+00 : f32
    %18 = vector.broadcast %cst_6 : f32 to vector<19x256xf32>
    %19 = arith.select %10, %1, %18 : vector<19x256xi1>, vector<19x256xf32>
    %cst_7 = arith.constant dense<0.000000e+00> : vector<256xf32>
    %20 = vector.multi_reduction <add>, %19, %cst_7 [0] : vector<19x256xf32> to vector<256xf32>
    %21 = vector.shape_cast %20 : vector<256xf32> to vector<1x256xf32>
    %22 = arith.subf %21, %12 : vector<1x256xf32>
    %23 = math.log %17 : vector<1x256xf32>
    %24 = arith.subf %22, %23 : vector<1x256xf32>
    %cst_8 = arith.constant 8.373000e-01 : f32
    %25 = vector.broadcast %cst_8 : f32 to vector<1x256xf32>
    %c1_i32 = arith.constant 1 : i32
    %26 = vector.broadcast %c1_i32 : i32 to vector<1x256xi32>
    %27 = arith.cmpi eq, %7, %26 : vector<1x256xi32>
    %cst_9 = arith.constant 9.180000e-01 : f32
    %28 = vector.broadcast %cst_9 : f32 to vector<1x256xf32>
    %29 = arith.select %27, %28, %25 : vector<1x256xi1>, vector<1x256xf32>
    %c2_i32 = arith.constant 2 : i32
    %30 = vector.broadcast %c2_i32 : i32 to vector<1x256xi32>
    %31 = arith.cmpi eq, %7, %30 : vector<1x256xi32>
    %cst_10 = arith.constant 0.865999996 : f32
    %32 = vector.broadcast %cst_10 : f32 to vector<1x256xf32>
    %33 = arith.select %31, %32, %29 : vector<1x256xi1>, vector<1x256xf32>
    %c3_i32 = arith.constant 3 : i32
    %34 = vector.broadcast %c3_i32 : i32 to vector<1x256xi32>
    %35 = arith.cmpi eq, %7, %34 : vector<1x256xi32>
    %cst_11 = arith.constant 1.034500e+00 : f32
    %36 = vector.broadcast %cst_11 : f32 to vector<1x256xf32>
    %37 = arith.select %35, %36, %33 : vector<1x256xi1>, vector<1x256xf32>
    %c4_i32 = arith.constant 4 : i32
    %38 = vector.broadcast %c4_i32 : i32 to vector<1x256xi32>
    %39 = arith.cmpi eq, %7, %38 : vector<1x256xi32>
    %cst_12 = arith.constant 1.016600e+00 : f32
    %40 = vector.broadcast %cst_12 : f32 to vector<1x256xf32>
    %41 = arith.select %39, %40, %37 : vector<1x256xi1>, vector<1x256xf32>
    %c5_i32 = arith.constant 5 : i32
    %42 = vector.broadcast %c5_i32 : i32 to vector<1x256xi32>
    %43 = arith.cmpi eq, %7, %42 : vector<1x256xi32>
    %cst_13 = arith.constant 9.969000e-01 : f32
    %44 = vector.broadcast %cst_13 : f32 to vector<1x256xf32>
    %45 = arith.select %43, %44, %41 : vector<1x256xi1>, vector<1x256xf32>
    %c6_i32 = arith.constant 6 : i32
    %46 = vector.broadcast %c6_i32 : i32 to vector<1x256xi32>
    %47 = arith.cmpi eq, %7, %46 : vector<1x256xi32>
    %cst_14 = arith.constant 0.975399971 : f32
    %48 = vector.broadcast %cst_14 : f32 to vector<1x256xf32>
    %49 = arith.select %47, %48, %45 : vector<1x256xi1>, vector<1x256xf32>
    %c7_i32 = arith.constant 7 : i32
    %50 = vector.broadcast %c7_i32 : i32 to vector<1x256xi32>
    %51 = arith.cmpi eq, %7, %50 : vector<1x256xi32>
    %cst_15 = arith.constant 1.048900e+00 : f32
    %52 = vector.broadcast %cst_15 : f32 to vector<1x256xf32>
    %53 = arith.select %51, %52, %49 : vector<1x256xi1>, vector<1x256xf32>
    %c8_i32 = arith.constant 8 : i32
    %54 = vector.broadcast %c8_i32 : i32 to vector<1x256xi32>
    %55 = arith.cmpi eq, %7, %54 : vector<1x256xi32>
    %cst_16 = arith.constant 8.786000e-01 : f32
    %56 = vector.broadcast %cst_16 : f32 to vector<1x256xf32>
    %57 = arith.select %55, %56, %53 : vector<1x256xi1>, vector<1x256xf32>
    %c9_i32 = arith.constant 9 : i32
    %58 = vector.broadcast %c9_i32 : i32 to vector<1x256xi32>
    %59 = arith.cmpi eq, %7, %58 : vector<1x256xi32>
    %cst_17 = arith.constant 1.002300e+00 : f32
    %60 = vector.broadcast %cst_17 : f32 to vector<1x256xf32>
    %61 = arith.select %59, %60, %57 : vector<1x256xi1>, vector<1x256xf32>
    %c10_i32 = arith.constant 10 : i32
    %62 = vector.broadcast %c10_i32 : i32 to vector<1x256xi32>
    %63 = arith.cmpi eq, %7, %62 : vector<1x256xi32>
    %cst_18 = arith.constant 0.953899979 : f32
    %64 = vector.broadcast %cst_18 : f32 to vector<1x256xf32>
    %65 = arith.select %63, %64, %61 : vector<1x256xi1>, vector<1x256xf32>
    %c11_i32 = arith.constant 11 : i32
    %66 = vector.broadcast %c11_i32 : i32 to vector<1x256xi32>
    %67 = arith.cmpi eq, %7, %66 : vector<1x256xi32>
    %cst_19 = arith.constant 9.843000e-01 : f32
    %68 = vector.broadcast %cst_19 : f32 to vector<1x256xf32>
    %69 = arith.select %67, %68, %65 : vector<1x256xi1>, vector<1x256xf32>
    %c12_i32 = arith.constant 12 : i32
    %70 = vector.broadcast %c12_i32 : i32 to vector<1x256xi32>
    %71 = arith.cmpi eq, %7, %70 : vector<1x256xi32>
    %cst_20 = arith.constant 1.111600e+00 : f32
    %72 = vector.broadcast %cst_20 : f32 to vector<1x256xf32>
    %73 = arith.select %71, %72, %69 : vector<1x256xi1>, vector<1x256xf32>
    %c13_i32 = arith.constant 13 : i32
    %74 = vector.broadcast %c13_i32 : i32 to vector<1x256xi32>
    %75 = arith.cmpi eq, %7, %74 : vector<1x256xi32>
    %cst_21 = arith.constant 0.903699994 : f32
    %76 = vector.broadcast %cst_21 : f32 to vector<1x256xf32>
    %77 = arith.select %75, %76, %73 : vector<1x256xi1>, vector<1x256xf32>
    %c14_i32 = arith.constant 14 : i32
    %78 = vector.broadcast %c14_i32 : i32 to vector<1x256xi32>
    %79 = arith.cmpi eq, %7, %78 : vector<1x256xi32>
    %cst_22 = arith.constant 1.086500e+00 : f32
    %80 = vector.broadcast %cst_22 : f32 to vector<1x256xf32>
    %81 = arith.select %79, %80, %77 : vector<1x256xi1>, vector<1x256xf32>
    %c15_i32 = arith.constant 15 : i32
    %82 = vector.broadcast %c15_i32 : i32 to vector<1x256xi32>
    %83 = arith.cmpi eq, %7, %82 : vector<1x256xi32>
    %cst_23 = arith.constant 1.095500e+00 : f32
    %84 = vector.broadcast %cst_23 : f32 to vector<1x256xf32>
    %85 = arith.select %83, %84, %81 : vector<1x256xi1>, vector<1x256xf32>
    %c16_i32 = arith.constant 16 : i32
    %86 = vector.broadcast %c16_i32 : i32 to vector<1x256xi32>
    %87 = arith.cmpi eq, %7, %86 : vector<1x256xi32>
    %cst_24 = arith.constant 1.086500e+00 : f32
    %88 = vector.broadcast %cst_24 : f32 to vector<1x256xf32>
    %89 = arith.select %87, %88, %85 : vector<1x256xi1>, vector<1x256xf32>
    %c17_i32 = arith.constant 17 : i32
    %90 = vector.broadcast %c17_i32 : i32 to vector<1x256xi32>
    %91 = arith.cmpi eq, %7, %90 : vector<1x256xi32>
    %cst_25 = arith.constant 1.152900e+00 : f32
    %92 = vector.broadcast %cst_25 : f32 to vector<1x256xf32>
    %93 = arith.select %91, %92, %89 : vector<1x256xi1>, vector<1x256xf32>
    %c18_i32 = arith.constant 18 : i32
    %94 = vector.broadcast %c18_i32 : i32 to vector<1x256xi32>
    %95 = arith.cmpi eq, %7, %94 : vector<1x256xi32>
    %cst_26 = arith.constant 1.050700e+00 : f32
    %96 = vector.broadcast %cst_26 : f32 to vector<1x256xf32>
    %97 = arith.select %95, %96, %93 : vector<1x256xi1>, vector<1x256xf32>
    %98 = math.exp %24 : vector<1x256xf32>
    %cst_27 = arith.constant 2.000000e+00 : f32
    %99 = vector.broadcast %cst_27 : f32 to vector<1x256xf32>
    %100 = arith.select %5, %98, %99 : vector<1x256xi1>, vector<1x256xf32>
    %c0_28 = arith.constant 0 : index
    %c0_29 = arith.constant 0 : index
    %c0_30 = arith.constant 0 : index
    %101 = vector.load %arg4[%c0_28, %c0_29, %c0_30] : memref<1x1x256xf32, #tpu.memory_space<vmem>>, vector<1x1x256xf32>
    %102 = vector.shape_cast %101 : vector<1x1x256xf32> to vector<1x256xf32>
    %103 = vector.shape_cast %100 : vector<1x256xf32> to vector<1x1x256xf32>
    tpu.vector_store %arg4[%c0_28, %c0_29, %c0_30], %103 {strides = array<i32>} : memref<1x1x256xf32, #tpu.memory_space<vmem>>, vector<1x1x256xf32>,
    %cst_31 = arith.constant 0.000000e+00 : f32
    %104 = vector.broadcast %cst_31 : f32 to vector<1x256xf32>
    %105 = arith.subf %104, %97 : vector<1x256xf32>
    %106 = arith.mulf %105, %24 : vector<1x256xf32>
    %cst_32 = arith.constant 0.000000e+00 : f32
    %107 = vector.broadcast %cst_32 : f32 to vector<1x256xf32>
    %108 = arith.select %5, %106, %107 : vector<1x256xi1>, vector<1x256xf32>
    %c0_33 = arith.constant 0 : index
    %c0_34 = arith.constant 0 : index
    %c0_35 = arith.constant 0 : index
    %109 = vector.load %arg5[%c0_33, %c0_34, %c0_35] : memref<1x1x256xf32, #tpu.memory_space<vmem>>, vector<1x1x256xf32>
    %110 = vector.shape_cast %109 : vector<1x1x256xf32> to vector<1x256xf32>
    %111 = vector.shape_cast %108 : vector<1x256xf32> to vector<1x1x256xf32>
    tpu.vector_store %arg5[%c0_33, %c0_34, %c0_35], %111 {strides = array<i32>} : memref<1x1x256xf32, #tpu.memory_space<vmem>>, vector<1x1x256xf32>,
    return
  }
  func.func @transform_0(%arg0: i32, %arg1: i32) -> (i32, i32, i32) {
    %c0_i32 = arith.constant 0 : i32
    %c0_i32_0 = arith.constant 0 : i32
    return %arg0, %c0_i32, %arg1 : i32, i32, i32
  }
  func.func @transform_1(%arg0: i32, %arg1: i32) -> (i32, i32, i32) {
    %c0_i32 = arith.constant 0 : i32
    %c0_i32_0 = arith.constant 0 : i32
    return %arg0, %c0_i32, %arg1 : i32, i32, i32
  }
  func.func @transform_2(%arg0: i32, %arg1: i32) -> (i32, i32, i32) {
    %c0_i32 = arith.constant 0 : i32
    %c0_i32_0 = arith.constant 0 : i32
    return %arg0, %c0_i32, %arg1 : i32, i32, i32
  }
  func.func @transform_3(%arg0: i32, %arg1: i32) -> (i32, i32, i32) {
    %c0_i32 = arith.constant 0 : i32
    %c0_i32_0 = arith.constant 0 : i32
    return %arg0, %c0_i32, %arg1 : i32, i32, i32
  }
}

module attributes {stable_mosaic.version = 11 : i64} {
  func.func @_ohem_reduce_kernel(%arg0: i32, %arg1: i32, %arg2: memref<1x1x256xf32, #tpu.memory_space<vmem>>, %arg3: memref<1x1x256xf32, #tpu.memory_space<vmem>>, %arg4: memref<1xf32, #tpu.memory_space<smem>>, %arg5: memref<1x1xf32, #tpu.memory_space<vmem>>, %arg6: memref<1x1xf32, #tpu.memory_space<vmem>>, %arg7: memref<1x1xf32, #tpu.memory_space<vmem>>) attributes {dimension_semantics = [#tpu.dimension_semantics<arbitrary>, #tpu.dimension_semantics<arbitrary>], iteration_bounds = array<i64: 2, 1>, scalar_prefetch = 0 : i64, scratch_operands = 2 : i64, tpu.core_type = #tpu.core_type<tc>, window_params = [{transform_indices = @transform_0, window_bounds = array<i64: 1, 1, 256>}, {transform_indices = @transform_1, window_bounds = array<i64: 1, 1, 256>}, {transform_indices = @transform_2, window_bounds = array<i64: 1>}, {pipeline_mode = #tpu.pipeline_mode<synchronous>, transform_indices = @transform_3, window_bounds = array<i64: 1, 1>}]} {
    %c0_i32 = arith.constant 0 : i32
    %0 = arith.cmpi eq, %arg0, %c0_i32 : i32
    %c0_i32_0 = arith.constant 0 : i32
    %1 = arith.cmpi eq, %arg1, %c0_i32_0 : i32
    %2 = arith.andi %0, %1 : i1
    %3 = arith.extui %2 : i1 to i32
    %c0_i32_1 = arith.constant 0 : i32
    %4 = arith.cmpi ne, %3, %c0_i32_1 : i32
    scf.if %4 {
      %cst_19 = arith.constant 0.000000e+00 : f32
      %30 = vector.broadcast %cst_19 : f32 to vector<1x1xf32>
      %c0_20 = arith.constant 0 : index
      %c0_21 = arith.constant 0 : index
      %31 = vector.load %arg6[%c0_20, %c0_21] : memref<1x1xf32, #tpu.memory_space<vmem>>, vector<1x1xf32>
      tpu.vector_store %arg6[%c0_20, %c0_21], %30 {strides = array<i32>} : memref<1x1xf32, #tpu.memory_space<vmem>>, vector<1x1xf32>,
      %cst_22 = arith.constant 0.000000e+00 : f32
      %32 = vector.broadcast %cst_22 : f32 to vector<1x1xf32>
      %c0_23 = arith.constant 0 : index
      %c0_24 = arith.constant 0 : index
      %33 = vector.load %arg7[%c0_23, %c0_24] : memref<1x1xf32, #tpu.memory_space<vmem>>, vector<1x1xf32>
      tpu.vector_store %arg7[%c0_23, %c0_24], %32 {strides = array<i32>} : memref<1x1xf32, #tpu.memory_space<vmem>>, vector<1x1xf32>,
    } else {
    }
    %c0 = arith.constant 0 : index
    %5 = memref.load %arg4[%c0] : memref<1xf32, #tpu.memory_space<smem>>
    %c0_2 = arith.constant 0 : index
    %c0_3 = arith.constant 0 : index
    %c0_4 = arith.constant 0 : index
    %6 = vector.load %arg2[%c0_2, %c0_3, %c0_4] : memref<1x1x256xf32, #tpu.memory_space<vmem>>, vector<1x1x256xf32>
    %7 = vector.shape_cast %6 : vector<1x1x256xf32> to vector<1x256xf32>
    %c0_5 = arith.constant 0 : index
    %c0_6 = arith.constant 0 : index
    %c0_7 = arith.constant 0 : index
    %8 = vector.load %arg3[%c0_5, %c0_6, %c0_7] : memref<1x1x256xf32, #tpu.memory_space<vmem>>, vector<1x1x256xf32>
    %9 = vector.shape_cast %8 : vector<1x1x256xf32> to vector<1x256xf32>
    %10 = vector.broadcast %5 : f32 to vector<1x256xf32>
    %11 = arith.cmpf olt, %7, %10 : vector<1x256xf32>
    %12 = arith.extui %11 : vector<1x256xi1> to vector<1x256xi32>
    %13 = arith.sitofp %12 : vector<1x256xi32> to vector<1x256xf32>
    %c0_8 = arith.constant 0 : index
    %c0_9 = arith.constant 0 : index
    %14 = vector.load %arg6[%c0_8, %c0_9] : memref<1x1xf32, #tpu.memory_space<vmem>>, vector<1x1xf32>
    %15 = arith.mulf %13, %9 : vector<1x256xf32>
    %cst = arith.constant dense<0.000000e+00> : vector<1xf32>
    %16 = vector.multi_reduction <add>, %15, %cst [1] : vector<1x256xf32> to vector<1xf32>
    %17 = vector.shape_cast %16 : vector<1xf32> to vector<1x1xf32>
    %18 = arith.addf %14, %17 : vector<1x1xf32>
    %c0_10 = arith.constant 0 : index
    %c0_11 = arith.constant 0 : index
    %19 = vector.load %arg6[%c0_10, %c0_11] : memref<1x1xf32, #tpu.memory_space<vmem>>, vector<1x1xf32>
    tpu.vector_store %arg6[%c0_10, %c0_11], %18 {strides = array<i32>} : memref<1x1xf32, #tpu.memory_space<vmem>>, vector<1x1xf32>,
    %c0_12 = arith.constant 0 : index
    %c0_13 = arith.constant 0 : index
    %20 = vector.load %arg7[%c0_12, %c0_13] : memref<1x1xf32, #tpu.memory_space<vmem>>, vector<1x1xf32>
    %cst_14 = arith.constant dense<0.000000e+00> : vector<1xf32>
    %21 = vector.multi_reduction <add>, %13, %cst_14 [1] : vector<1x256xf32> to vector<1xf32>
    %22 = vector.shape_cast %21 : vector<1xf32> to vector<1x1xf32>
    %23 = arith.addf %20, %22 : vector<1x1xf32>
    %c0_15 = arith.constant 0 : index
    %c0_16 = arith.constant 0 : index
    %24 = vector.load %arg7[%c0_15, %c0_16] : memref<1x1xf32, #tpu.memory_space<vmem>>, vector<1x1xf32>
    tpu.vector_store %arg7[%c0_15, %c0_16], %23 {strides = array<i32>} : memref<1x1xf32, #tpu.memory_space<vmem>>, vector<1x1xf32>,
    %c1_i32 = arith.constant 1 : i32
    %25 = arith.cmpi eq, %arg0, %c1_i32 : i32
    %c0_i32_17 = arith.constant 0 : i32
    %26 = arith.cmpi eq, %arg1, %c0_i32_17 : i32
    %27 = arith.andi %25, %26 : i1
    %28 = arith.extui %27 : i1 to i32
    %c0_i32_18 = arith.constant 0 : i32
    %29 = arith.cmpi ne, %28, %c0_i32_18 : i32
    scf.if %29 {
      %c0_19 = arith.constant 0 : index
      %c0_20 = arith.constant 0 : index
      %30 = vector.load %arg6[%c0_19, %c0_20] : memref<1x1xf32, #tpu.memory_space<vmem>>, vector<1x1xf32>
      %c0_21 = arith.constant 0 : index
      %c0_22 = arith.constant 0 : index
      %31 = vector.load %arg7[%c0_21, %c0_22] : memref<1x1xf32, #tpu.memory_space<vmem>>, vector<1x1xf32>
      %32 = arith.divf %30, %31 : vector<1x1xf32>
      %c0_23 = arith.constant 0 : index
      %c0_24 = arith.constant 0 : index
      %33 = vector.load %arg5[%c0_23, %c0_24] : memref<1x1xf32, #tpu.memory_space<vmem>>, vector<1x1xf32>
      tpu.vector_store %arg5[%c0_23, %c0_24], %32 {strides = array<i32>} : memref<1x1xf32, #tpu.memory_space<vmem>>, vector<1x1xf32>,
    } else {
    }
    return
  }
  func.func @transform_0(%arg0: i32, %arg1: i32) -> (i32, i32, i32) {
    %c0_i32 = arith.constant 0 : i32
    %c0_i32_0 = arith.constant 0 : i32
    return %arg0, %c0_i32, %arg1 : i32, i32, i32
  }
  func.func @transform_1(%arg0: i32, %arg1: i32) -> (i32, i32, i32) {
    %c0_i32 = arith.constant 0 : i32
    %c0_i32_0 = arith.constant 0 : i32
    return %arg0, %c0_i32, %arg1 : i32, i32, i32
  }
  func.func @transform_2(%arg0: i32, %arg1: i32) -> i32 {
    %c0_i32 = arith.constant 0 : i32
    %c0_i32_0 = arith.constant 0 : i32
    return %c0_i32 : i32
  }
  func.func @transform_3(%arg0: i32, %arg1: i32) -> (i32, i32) {
    %c0_i32 = arith.constant 0 : i32
    %c0_i32_0 = arith.constant 0 : i32
    %c0_i32_1 = arith.constant 0 : i32
    return %c0_i32, %c0_i32_0 : i32, i32
  }
}

</mosaic_0001>

<bundles_post_ra>
// kernel: neg.0
= control target key start
LH: loop header
LB: loop body
LE: loop exit
PB: predicated region body
PF: predicated region fallthrough
CT: control target
= control target key end

     0   :  { %s72_s0 = inlined_call_operand.vmem [shape: f32[2,1,256], index: 0, kind: input, shape index: {}]   ;;  %s73_s1 = inlined_call_operand.vmem [shape: f32[2,1,256], index: 1, kind: output, shape index: {}]  }
   0x1   :  { %v2_v0 = vld [vmem:[%s72_s0] sm:$0x1]  ;;  %v32_v1 = vld [vmem:[%s72_s0 + $0x2] sm:$0x1]  ;;  %v34_v2 = vld [vmem:[%s72_s0 + $0x1] sm:$0x1] }
   0x2   :  { %v5_v3 = vxor.u32 2147483648, %v2_v0  ;;  %v12_v4 = vxor.u32 2147483648, %v32_v1  ;;  %v20_v5 = vxor.u32 2147483648, %v34_v2  ;;  %v36_v6 = vld [vmem:[%s72_s0 + $0x3] sm:$0x1] }
   0x3   :  { %v28_v7 = vxor.u32 2147483648, %v36_v6 }
   0x4   :  { %7 = vst [vmem:[%s73_s1] sm:$0x1] %v5_v3  ;;  %33 = vst [vmem:[%s73_s1 + $0x2] sm:$0x1] %v12_v4 }
   0x5   :  { %35 = vst [vmem:[%s73_s1 + $0x1] sm:$0x1] %v20_v5  ;;  %37 = vst [vmem:[%s73_s1 + $0x3] sm:$0x1] %v28_v7 }

// kernel: _lambda_.1
= control target key start
LH: loop header
LB: loop body
LE: loop exit
PB: predicated region body
PF: predicated region fallthrough
CT: control target
= control target key end

     0   :  { %s707_s12 = smov 0   ;;  %s709_s13 = smov 0   ;;  %s842_s0 = inlined_call_operand.vmem [shape: f32[2,19,256], index: 0, kind: input, shape index: {}]   ;;  %s843_s1 = inlined_call_operand.vmem [shape: s32[2,1,256], index: 1, kind: input, shape index: {}]   ;;  %s844_s2 = inlined_call_operand.vmem [shape: f32[2,1,256], index: 2, kind: output, shape index: {0}]   ;;  %s845_s3 = inlined_call_operand.vmem [shape: f32[2,1,256], index: 3, kind: output, shape index: {1}]  }
   0x1   :  { %s711_s14 = smov 0  }
   0x2 LB: > { %s26_s15 = sadd.s32 1, %s679_s13  ;;  %p607_p0 = scmp.ge.s32.totalorder %s683_s14, 1  ;;  %s683_s14 = sphi %s711_s14, %s14_s14   ;;  %s679_s13 = sphi %s709_s13, %s847_s13   ;;  %s675_s12 = sphi %s707_s12, %s846_s12  }
   0x3   : > { %p28_p1 = scmp.ge.s32.totalorder %s26_s15, 2  ;;  %p179_p2 = scmp.lt.s32.totalorder %s683_s14, 3 }
   0x5   : > { %s849_s15 = smov (%p28_p1, %s26_s15), 0  ;;  %p180_p3 = pnand %p607_p0, %p179_p2 }
   0x6   : > { %p227_p4 = scmp.lt.s32.totalorder (!%p180_p3), %s675_s12, 1  ;;  %vm290_vm0 = vcmask (!%p180_p3), 1042432   ;;  %v272_v12 = vlaneseq (!%p180_p3)  ;;  %v685_v30 = vmov (!%p180_p3), 0.8373  }
   0x7   : > { %183 = sbr.rel (%p180_p3) target bundleno = 108 (0x6c), region = 28 }
   0x8   : > { %v758_v18 = vshrl.u32 (!%p180_p3), %v272_v12, 7 }
   0xa   : > { %v278_v24 = vsub.s32 (!%p180_p3), 0, %v758_v18  ;;  %v282_v27 = vsub.s32 (!%p180_p3), 1, %v758_v18  ;;  %v274_v32 = vadd.s32 (!%p180_p3), 8, %v758_v18  ;;  %v275_v33 = vadd.s32 (!%p180_p3), 16, %v758_v18 }
   0xe   : > { %s851_s12 = smov (!%p227_p4, %s675_s12), 1 }
   0xf   : > { %s614_s16 = smul.u32 48, %s851_s12  ;;  %s732_s20 = sshll.u32 %s851_s12, 1 }
  0x10   : > { %s243_s23 = scalar_lea.vmem %s843_s1, %s732_s20  ;;  %s261_s26 = scalar_lea.vmem %s845_s3, %s732_s20 }
  0x11   : > { %s234_s19 = scalar_lea.vmem %s842_s0, %s614_s16  ;;  %v754_v13 = vld [vmem:[%s243_s23] sm:$0x3]  ;;  %s252_s29 = scalar_lea.vmem %s844_s2, %s732_s20 }
  0x12   : > { %v728_v0 = vld [vmem:[%s234_s19] sm:$0xff]  ;;  %v730_v1 = vld [vmem:[%s234_s19 + $0x8] sm:$0xff]  ;;  %v738_v4 = vld [vmem:[%s234_s19 + $0x10] sm:$0xff]  ;;  %vm270_vm1 = vcmp.ne.s32.totalorder %v754_v13, 4294967295 }
  0x13   : > { %v734_v2 = vld [vmem:[%s234_s19 + $0x20] sm:$0x7]  ;;  %v736_v3 = vld [vmem:[%s234_s19 + $0x28] sm:$0x7]  ;;  %v740_v5 = vld [vmem:[%s234_s19 + $0x18] sm:$0xff]  ;;  %v763_v21 = vsel %vm270_vm1, %v754_v13, 0 }
  0x14   : > { %v291_v6 = vsel %vm290_vm0, %v734_v2, -inf  ;;  %v300_v7 = vsel %vm290_vm0, %v736_v3, -inf  ;;  %vm377_vm2 = vcmp.eq.s32.totalorder %v763_v21, 1  ;;  %vm379_vm3 = vcmp.eq.s32.totalorder %v763_v21, 2 }
  0x15   : > { %v292_v8 = vmax.f32 %v728_v0, %v291_v6  ;;  %v301_v9 = vmax.f32 %v730_v1, %v300_v7  ;;  %v378_v31 = vsel %vm377_vm2, 0.918, %v685_v30  ;;  %v279_v34 = vrot.slane %v763_v21, %v278_v24 }
  0x16   : > { %v380_v41 = vsel %vm379_vm3, 0.866, %v378_v31  ;;  %vm381_vm4 = vcmp.eq.s32.totalorder %v763_v21, 3  ;;  %v283_v42 = vrot.slane %v763_v21, %v282_v27  ;;  %vm383_vm5 = vcmp.eq.s32.totalorder %v763_v21, 4 }
  0x17   : > { %v293_v10 = vmax.f32 %v292_v8, %v738_v4  ;;  %v302_v11 = vmax.f32 %v301_v9, %v740_v5  ;;  %v382_v48 = vsel %vm381_vm4, 1.0345, %v380_v41  ;;  %vm284_vm6 = vcmp.eq.s32.totalorder %v758_v18, %v279_v34 }
  0x18   : > { %vm286_vm7 = vcmp.eq.s32.totalorder %v274_v32, %v279_v34  ;;  %vm285_vm8 = vcmp.eq.s32.totalorder %v758_v18, %v283_v42  ;;  %vm287_vm9 = vcmp.eq.s32.totalorder %v274_v32, %v283_v42  ;;  %vm288_vm10 = vcmp.eq.s32.totalorder %v275_v33, %v279_v34 }
  0x19   : > { %v294_v14 = vrot.slane %v293_v10, 4  ;;  %v303_v15 = vrot.slane %v302_v11, 4  ;;  %vm289_vm11 = vcmp.eq.s32.totalorder %v275_v33, %v283_v42  ;;  %v384_v50 = vsel %vm383_vm5, 1.0166, %v382_v48 }
  0x1a   : > { %vm385_vm12 = vcmp.eq.s32.totalorder %v763_v21, 5  ;;  %v345_v51 = vsel %vm284_vm6, %v728_v0, 0.0  ;;  %v347_v52 = vsel %vm286_vm7, %v738_v4, 0.0  ;;  %v346_v53 = vsel %vm285_vm8, %v730_v1, 0.0 }
  0x1b   : > { %v295_v16 = vmax.f32 %v293_v10, %v294_v14  ;;  %v304_v17 = vmax.f32 %v302_v11, %v303_v15  ;;  %v348_v54 = vsel %vm287_vm9, %v740_v5, 0.0  ;;  %v349_v55 = vsel %vm288_vm10, %v734_v2, 0.0 }
  0x1c   : > { %v350_v56 = vsel %vm289_vm11, %v736_v3, 0.0  ;;  %v386_v57 = vsel %vm385_vm12, 0.9969, %v384_v50  ;;  %vm387_vm13 = vcmp.eq.s32.totalorder %v763_v21, 6  ;;  %v351_v58 = vadd.f32 %v347_v52, %v345_v51 }
  0x1d   : > { %v296_v19 = vrot.slane %v295_v16, 2  ;;  %v305_v20 = vrot.slane %v304_v17, 2  ;;  %v352_v59 = vsel %vm290_vm0, %v349_v55, 0.0  ;;  %v360_v60 = vadd.f32 %v348_v54, %v346_v53 }
  0x1e   : > { %v361_v61 = vsel %vm290_vm0, %v350_v56, 0.0  ;;  %v388_v62 = vsel %vm387_vm13, 0.9754, %v386_v57  ;;  %vm389_vm14 = vcmp.eq.s32.totalorder %v763_v21, 7  ;;  %vm391_vm15 = vcmp.eq.s32.totalorder %v763_v21, 8 }
  0x1f   : > { %v297_v22 = vmax.f32 %v295_v16, %v296_v19  ;;  %v306_v23 = vmax.f32 %v304_v17, %v305_v20  ;;  %vm393_vm2 = vcmp.eq.s32.totalorder %v763_v21, 9  ;;  %vm395_vm3 = vcmp.eq.s32.totalorder %v763_v21, 10 }
  0x20   : > { %vm397_vm4 = vcmp.eq.s32.totalorder %v763_v21, 11  ;;  %vm401_vm5 = vcmp.eq.s32.totalorder %v763_v21, 13  ;;  %vm403_vm6 = vcmp.eq.s32.totalorder %v763_v21, 14  ;;  %vm405_vm7 = vcmp.eq.s32.totalorder %v763_v21, 15 }
  0x21   : > { %v298_v25 = vrot.slane %v297_v22, 1  ;;  %v307_v26 = vrot.slane %v306_v23, 1  ;;  %vm407_vm8 = vcmp.eq.s32.totalorder %v763_v21, 16  ;;  %v686_v52 = vmov 1966171168  }
  0x22   : > { %v421_v53 = vunpack.c.l.s4 %v686_v52  ;;  %vm409_vm9 = vcmp.eq.s32.totalorder %v763_v21, 17  ;;  %vm411_vm10 = vcmp.eq.s32.totalorder %v763_v21, 18  ;;  %vm438_vm11 = vcmp.lt.s32.totalorder %v272_v12, 256 }
  0x23   : > { %v768_v28 = vmax.f32 %v297_v22, %v298_v25  ;;  %v770_v29 = vmax.f32 %v306_v23, %v307_v26 }
  0x25   : > { %v309_v35 = vsub.f32 %v728_v0, %v768_v28  ;;  %v310_v36 = vsub.f32 %v730_v1, %v770_v29  ;;  %v311_v37 = vsub.f32 %v738_v4, %v768_v28  ;;  %v312_v38 = vsub.f32 %v740_v5, %v770_v29 }
  0x26   : > { %v313_v39 = vsub.f32 %v734_v2, %v768_v28  ;;  %v314_v40 = vsub.f32 %v736_v3, %v770_v29  ;;  %v353_v1 = vadd.f32 %v352_v59, %v351_v58  ;;  %v362_v5 = vadd.f32 %v361_v61, %v360_v60 }
  0x27   : > { %v315_v43 = vmul.f32 1.442695, %v309_v35  ;;  %v317_v44 = vmul.f32 1.442695, %v310_v36  ;;  %v319_v45 = vmul.f32 1.442695, %v311_v37  ;;  %v422_v58 = vunpack.c.0.s8 %v421_v53 }
  0x28   : > { %v321_v46 = vmul.f32 1.442695, %v312_v38  ;;  %v323_v47 = vmul.f32 1.442695, %v313_v39  ;;  %v325_v49 = vmul.f32 1.442695, %v314_v40 }
  0x29   : > { %641 = vpow2.f32 %v315_v43  ;;  %v390_v2 = vsel %vm389_vm14, 1.0489, %v388_v62  ;;  %v354_v11 = vrot.slane %v353_v1, 4  ;;  %v363_v17 = vrot.slane %v362_v5, 4 }
  0x2a   : > { %643 = vpow2.f32 %v317_v44  ;;  %v392_v14 = vsel %vm391_vm15, 0.8786, %v390_v2 }
  0x2b   : > { %645 = vpow2.f32 %v319_v45  ;;  %v394_v22 = vsel %vm393_vm2, 1.0023, %v392_v14  ;;  %v355_v24 = vadd.f32 %v354_v11, %v353_v1  ;;  %v364_v26 = vadd.f32 %v363_v17, %v362_v5 }
  0x2c   : > { %647 = vpow2.f32 %v321_v46  ;;  %v396_v30 = vsel %vm395_vm3, 0.9539, %v394_v22  ;;  %v425_v1 = vsub.s32 %v422_v58, %v758_v18 }
  0x2d   : > { %649 = vpow2.f32 %v323_v47  ;;  %v356_v33 = vrot.slane %v355_v24, 2  ;;  %v365_v35 = vrot.slane %v364_v26, 2  ;;  %v398_v36 = vsel %vm397_vm4, 0.9843, %v396_v30 }
  0x2e   : > { %651 = vpow2.f32 %v325_v49 }
  0x2f   : > { %v357_v40 = vadd.f32 %v356_v33, %v355_v24  ;;  %v366_v43 = vadd.f32 %v365_v35, %v364_v26 }
  0x31   : > { %v358_v46 = vrot.slane %v357_v40, 1  ;;  %v367_v47 = vrot.slane %v366_v43, 1 }
  0x33   : > { %v642_v63 = vpop.eup %641  ;;  %v359_v49 = vadd.f32 %v358_v46, %v357_v40  ;;  %v368_v50 = vadd.f32 %v367_v47, %v366_v43 }
  0x34   : > { %v644_v0 = vpop.eup %643 }
  0x35   : > { %v646_v4 = vpop.eup %645  ;;  %v369_v54 = vsub.f32 %v359_v49, %v768_v28  ;;  %v370_v57 = vsub.f32 %v368_v50, %v770_v29 }
  0x36   : > { %v648_v3 = vpop.eup %647  ;;  %v327_v6 = vadd.f32 %v646_v4, %v642_v63 }
  0x37   : > { %v650_v7 = vpop.eup %649  ;;  %v336_v8 = vadd.f32 %v648_v3, %v644_v0 }
  0x38   : > { %v652_v9 = vpop.eup %651  ;;  %v328_v10 = vsel %vm290_vm0, %v650_v7, 0.0 }
  0x39   : > { %v329_v15 = vadd.f32 %v328_v10, %v327_v6  ;;  %v337_v16 = vsel %vm290_vm0, %v652_v9, 0.0  ;;  %vm399_vm0 = vcmp.eq.s32.totalorder %v763_v21, 12 }
  0x3a   : > { %v338_v19 = vadd.f32 %v337_v16, %v336_v8  ;;  %v400_v41 = vsel %vm399_vm0, 1.1116, %v398_v36 }
  0x3b   : > { %v330_v20 = vrot.slane %v329_v15, 4  ;;  %v402_v45 = vsel %vm401_vm5, 0.9037, %v400_v41 }
  0x3c   : > { %v339_v23 = vrot.slane %v338_v19, 4  ;;  %v404_v48 = vsel %vm403_vm6, 1.0865, %v402_v45 }
  0x3d   : > { %v331_v25 = vadd.f32 %v330_v20, %v329_v15  ;;  %v406_v51 = vsel %vm405_vm7, 1.0955, %v404_v48 }
  0x3e   : > { %v340_v27 = vadd.f32 %v339_v23, %v338_v19  ;;  %v408_v55 = vsel %vm407_vm8, 1.0865, %v406_v51 }
  0x3f   : > { %v332_v31 = vrot.slane %v331_v25, 2  ;;  %v410_v62 = vsel %vm409_vm9, 1.1529, %v408_v55 }
  0x40   : > { %v341_v32 = vrot.slane %v340_v27, 2  ;;  %v412_v4 = vsel %vm411_vm10, 1.0507, %v410_v62 }
  0x41   : > { %v333_v34 = vadd.f32 %v332_v31, %v331_v25  ;;  %v441_v29 = vsub.f32 0.0, %v412_v4 }
  0x42   : > { %v342_v37 = vadd.f32 %v341_v32, %v340_v27 }
  0x43   : > { %v334_v38 = vrot.slane %v333_v34, 1 }
  0x44   : > { %v343_v39 = vrot.slane %v342_v37, 1 }
  0x45   : > { %v335_v42 = vadd.f32 %v334_v38, %v333_v34 }
  0x46   : > { %v344_v44 = vadd.f32 %v343_v39, %v342_v37 }
  0x47   : > { %653 = vlog2.f32 %v335_v42 }
  0x48   : > { %655 = vlog2.f32 %v344_v44 }
  0x51   : > { %v654_v56 = vpop.eup %653 }
  0x52   : > { %v656_v59 = vpop.eup %655  ;;  %v372_v60 = vmul.f32 0.6931472, %v654_v56 }
  0x53   : > { %v374_v61 = vmul.f32 0.6931472, %v656_v59 }
  0x54   : > { %v375_v63 = vsub.f32 %v369_v54, %v372_v60 }
  0x55   : > { %v376_v0 = vsub.f32 %v370_v57, %v374_v61 }
  0x56   : > { %v413_v28 = vmul.f32 1.442695, %v375_v63 }
  0x57   : > { %v415_v5 = vmul.f32 1.442695, %v376_v0  ;;  %v444_v2 = vcombine.low %v375_v63, %v376_v0 }
  0x58   : > { %657 = vpow2.f32 %v413_v28 }
  0x59   : > { %659 = vpow2.f32 %v415_v5  ;;  %v451_v3 = vrot.slane %v444_v2, %v425_v1 }
  0x5b   : > { %v458_v6 = vrot.slane %v451_v3, %v425_v1 }
  0x5d   : > { %v460_v21 = vmul.f32 %v458_v6, %v441_v29 }
  0x5f   : > { %v461_v18 = vsel %vm270_vm1, %v460_v21, 0.0 }
  0x60   : > { %462 = vst.msk [vmem:[%s261_s26] sm:$0x3] %vm438_vm11, %v461_v18 }
  0x62   : > { %v658_v7 = vpop.eup %657 }
  0x63   : > { %v660_v8 = vpop.eup %659 }
  0x64   : > { %v419_v9 = vcombine.low %v658_v7, %v660_v8 }
  0x66   : > { %v426_v10 = vrot.slane %v419_v9, %v425_v1 }
  0x68   : > { %v433_v11 = vrot.slane %v426_v10, %v425_v1 }
  0x6a   : > { %v435_v14 = vsel %vm270_vm1, %v433_v11, 2.0 }
  0x6b   : > { %440 = vst.msk [vmem:[%s252_s29] sm:$0x3] %vm438_vm11, %v435_v14 }
  0x6c PF: > { %s14_s14 = sadd.s32 1, %s683_s14   ;;  %s846_s12 = smov %s679_s13 }
  0x6d   : > { %p11_p5 = scmp.ge.s32.totalorder %s14_s14, 4   ;;  %s847_s13 = smov %s849_s15 }
  0x6f   :  { %13 = sbr.rel (!%p11_p5) target bundleno = 2 (0x2), region = 73 }

// kernel: branch_1_fun.1
= control target key start
LH: loop header
LB: loop body
LE: loop exit
PB: predicated region body
PF: predicated region fallthrough
CT: control target
= control target key end

     0   :  { %s554_s0 = inlined_call_operand.vmem [shape: f32[2,1,256], index: 0, kind: input, shape index: {}]   ;;  %s555_s1 = inlined_call_operand.vmem [shape: f32[2,1,256], index: 1, kind: input, shape index: {}]   ;;  %s556_s2 = inlined_call_operand.<no memory space> [shape: f32[1], index: 2, kind: input, shape index: {}]   ;;  %s557_s3 = inlined_call_operand.hbm [shape: f32[1,1], index: 3, kind: output, shape index: {}]  }
   0x1   :  { %8 = sst [smem:[#allocation4]] %s556_s2 }
   0x2   :  { %9 = vsyncpa [#allocation6], 0  ;;  %s486_s14 = smov 0   ;;  %s488_s15 = smov 0  }
   0x3   :  { %s490_s16 = smov 0  }
   0x4 LB: > { %s356_s2 = sadd.s32 4294967295, %s458_s16   ;;  %s27_s17 = sadd.s32 1, %s454_s15  ;;  %s458_s16 = sphi %s490_s16, %s15_s16   ;;  %s454_s15 = sphi %s488_s15, %s560_s15   ;;  %s450_s14 = sphi %s486_s14, %s559_s14  }
   0x5   : > { %p29_p0 = scmp.ge.s32.totalorder %s27_s17, 2  ;;  %p359_p1 = scmp.ge.s32.totalorder %s458_s16, 1 }
   0x6   : > { %p168_p2 = scmp.lt.s32.totalorder %s458_s16, 3 }
   0x7   : > { %s562_s17 = smov (%p29_p0, %s27_s17), 0 }
   0x8   : > { %p169_p3 = pnand %p359_p1, %p168_p2 }
   0x9   : > { %p199_p4 = scmp.lt.s32.totalorder (!%p169_p3), %s450_s14, 1  ;;  %p216_p5 = scmp.eq.s32.totalorder (!%p169_p3), %s450_s14, 0 }
   0xa   : > { %172 = sbr.rel (%p169_p3) target bundleno = 236 (0xec), region = 32 }
  0x11   : > { %s200_s18 = scalar_select %p199_p4, %s450_s14, 1 }
  0x12   : > { %221 = sbr.rel (!%p216_p5) target bundleno = 25 (0x19), region = 36  ;;  %vm222_vm0 = vcmask (%p216_p5), 0   ;;  %v460_v0 = vmov (%p216_p5), 0.0  }
  0x13   : > { %s360_s19 = sshll.u32 %s200_s18, 1  ;;  %223 = vst.msk [vmem:[#allocation2] sm:$0x1] (%p216_p5), %vm222_vm0, %v460_v0  ;;  %224 = vst.msk [vmem:[#allocation3] sm:$0x1] (%p216_p5), %vm222_vm0, %v460_v0 }
  0x14   : > { %s205_s22 = scalar_lea.vmem %s554_s0, %s360_s19  ;;  %s214_s25 = scalar_lea.vmem %s555_s1, %s360_s19 }
  0x19 PF: > { %s225_s26 = sld [smem:[#allocation4]]  ;;  %v235_v1 = vlaneseq  ;;  %v226_v3 = vld [vmem:[%s205_s22] sm:$0x3]  ;;  %v461_v8 = vmov 0.0   ;;  %vm245_vm2 = vcmask 1040384   ;;  %p273_p6 = scmp.eq.s32.totalorder %s450_s14, 1 }
  0x1a   : > { %v227_v4 = vld [vmem:[%s214_s25] sm:$0x3]  ;;  %vm252_vm3 = vcmask 0  }
  0x1b   : > { %v236_v2 = vshrl.u32 %v235_v1, 7  ;;  %v232_v21 = vld [vmem:[#allocation2] sm:$0x1]  ;;  %v254_v24 = vld [vmem:[#allocation3] sm:$0x1] }
  0x1d   : > { %v237_v6 = vsub.s32 0, %v236_v2  ;;  %v241_v7 = vsub.s32 1, %v236_v2 }
  0x1f   : > { %v228_v5 = vstv %s225_s26 }
  0x20   : > { %vm229_vm1 = vcmp.lt.f32.partialorder %v226_v3, %v228_v5 }
  0x21   : > { %v363_v9 = vsel %vm229_vm1, 1.0, %v461_v8 }
  0x22   : > { %v233_v10 = vmul.f32 %v363_v9, %v227_v4  ;;  %v259_v11 = vrot.slane %v363_v9, %v237_v6  ;;  %v263_v12 = vrot.slane %v363_v9, %v241_v7 }
  0x24   : > { %v238_v13 = vrot.slane %v233_v10, %v237_v6  ;;  %v242_v14 = vrot.slane %v233_v10, %v241_v7  ;;  %v266_v17 = vsel %vm245_vm2, %v259_v11, 0.0  ;;  %v267_v18 = vsel %vm245_vm2, %v263_v12, 0.0 }
  0x25   : > { %v268_v20 = vadd.f32 %v267_v18, %v266_v17 }
  0x26   : > { %v246_v15 = vsel %vm245_vm2, %v238_v13, 0.0  ;;  %v247_v16 = vsel %vm245_vm2, %v242_v14, 0.0 }
  0x27   : > { %v248_v19 = vadd.f32 %v247_v16, %v246_v15 }
  0x29   : > { %249 = vadd.xlane.f32.xlu0 %v248_v19 }
  0x2d   : > { %269 = vadd.xlane.f32.xlu0 %v268_v20 }
  0xb6   : > { %v250_v22 = vpop.xlane.xlu0 %249 }
  0xb7   : > { %v251_v23 = vadd.f32 %v250_v22, %v232_v21  ;;  %277 = sbr.rel (!%p273_p6) target bundleno = 211 (0xd3), region = 40 }
  0xb9   : > { %253 = vst.msk [vmem:[#allocation2] sm:$0x1] %vm252_vm3, %v251_v23 }
  0xba   : > { %v270_v25 = vpop.xlane.xlu0 %269 }
  0xbb   : > { %v271_v26 = vadd.f32 %v270_v25, %v254_v24 }
  0xbd   : > { %272 = vst.msk [vmem:[#allocation3] sm:$0x1] %vm252_vm3, %v271_v26 }
  0xc0   : > { %v278_v28 = vld [vmem:[#allocation2] sm:$0x1] }
  0xc4   : > { %v279_v27 = vld [vmem:[#allocation3] sm:$0x1] }
  0xc5   : > { %404 = vrcp.f32 %v279_v27 }
  0xcf   : > { %v405_v29 = vpop.eup %404 }
  0xd0   : > { %v281_v30 = vmul.f32 %v405_v29, %v278_v28 }
  0xd2   : > { %282 = vst.msk [vmem:[#allocation5] sm:$0x1] %vm252_vm3, %v281_v30 }
  0xd3 PF: > { %p519_p7 = scmp.eq.s32.totalorder %s356_s2, 1  ;;  %s462_s28 = smov [#allocation5]  }
  0xd4   : > { %s290_s29 = sshll.u32 %s462_s28, 4  ;;  %s291_s29 = int_to_ptr.vmem [resolvable:$true] %s290_s29 }
  0xd5   : > { %s406_s30 = scalar_lea.vmem %s291_s29, 16  ;;  %s412_s4 = scalar_lea.vmem %s291_s29, 32 }
  0xd6   : > { %p407_p8 = scmp.ne.s32.totalorder %s291_s29, %s406_s30  ;;  %p413_p11 = scmp.lt.s32.totalorder %s291_s29, %s291_s29 }
  0xd7   : > { %p414_p12 = scmp.lt.s32.totalorder %s412_s4, %s406_s30 }
  0xd8   : > { %p408_p9 = pnand %p407_p8, %p519_p7 }
  0xd9   : > { %p415_p13 = por %p414_p12, %p413_p11 }
  0xda   : > { %p409_p10 = pneg %p408_p9 }
  0xdc   : > { %p416_p0 = pnand %p415_p13, %p409_p10 }
  0xde   : > { %419 = shalt.err (!%p416_p0)
}
  0xdf   : > { %s420_s7 = scalar_lea.hbm %s557_s3, 16 }
  0xe0   : > { %p421_p1 = scmp.ne.s32.totalorder %s557_s3, %s420_s7  ;;  %p426_p4 = scmp.lt.u32.totalorder %s420_s7, %s557_s3 }
  0xe2   : > { %p422_p2 = pnand %p421_p1, %p519_p7 }
  0xe4   : > { %p423_p3 = pneg %p422_p2 }
  0xe6   : > { %p428_p5 = pnand %p426_p4, %p423_p3 }
  0xe8   : > { %431 = shalt.err (!%p428_p5)
}
  0xe9   : > { %372 = dma.vmem_to_hbm [thread:$0]  (%p519_p7), %s291_s29, 16, %s557_s3, [#allocation6]  }
  0xea   : > { %445 = dma.done.wait (%p519_p7), [#allocation6], 16  }
  0xeb   : > { %447 = vsyncadd (%p519_p7), [#allocation6], 4294967280 }
  0xec PF: > { %s15_s16 = sadd.s32 1, %s458_s16   ;;  %s559_s14 = smov %s454_s15 }
  0xed   : > { %p12_p6 = scmp.ge.s32.totalorder %s15_s16, 4   ;;  %s560_s15 = smov %s562_s17 }
  0xef   :  { %14 = sbr.rel (!%p12_p6) target bundleno = 4 (0x4), region = 70 }
  0xf6   :  { %303 = vsyncpa [#allocation6], 1 }
  0xf7   :  { %305 = vsyncpa [#allocation6 + $0x1], 1 }

</bundles_post_ra>
